<compile_context>
chip_gen: v5e
topology: v5e:2x2
jax: 0.10.0
libtpu: 0.0.40
codegen_flags: <defaults>
</compile_context>

<pallas_src>
import functools

import jax
import jax.numpy as jnp
from jax import lax
from jax.experimental import pallas as pl
from jax.experimental.pallas import tpu as pltpu


def _ceil_div(a, b):
    return -(-a // b)


def _round_up(a, b):
    return _ceil_div(a, b) * b


def neuralized_kmeans_kernel(x_ref, w_ref, b_ref, out_ref, *, n_groups, group_pad):
    # Upcast the (possibly bf16) X tile to f32 in VMEM (exact); W stays f32 so
    # only X's HBM representation is narrowed.
    x = x_ref[...].astype(jnp.float32)               # (tn, D)   rows on sublanes
    w = w_ref[...]                                   # (G*Mp, D) resident, f32
    # z^T = W @ X^T: contract the shared D axis of both operands -> (G*Mp, tn).
    # QK^T-style dot_general; no transpose op is emitted and per-row results
    # come out lane-major.
    zt = lax.dot_general(
        w, x,
        dimension_numbers=(((1,), (1,)), ((), ())),
        preferred_element_type=jnp.float32,
    )
    zt = zt + b_ref[...]                             # (G*Mp, 1) lane-broadcast bias

    res = None
    for g in range(n_groups):                        # small K; unrolled at trace time
        zg = zt[g * group_pad:(g + 1) * group_pad, :]        # (Mp, tn) aligned slice
        mg = jnp.min(zg, axis=0, keepdims=True)              # (1, tn) sublane reduce
        res = mg if res is None else jnp.maximum(res, mg)
    out_ref[0] = res                                 # lane-dense (1, tn) store


def neuralized_kmeans_forward(x, W, b, c=None, *, tn=None, vmem_limit_bytes=None):
    """Forward pass of NeuralizedKMeans.

    x: (N, D)   -- streamed in its own dtype; store X in bfloat16 for ~2x less
                   HBM traffic (accumulation stays float32 either way).
    W: (K, K-1, D), b: (K, K-1)  -- kept in float32 (tiny, precision-critical).
    c=None -> max over clusters of min over competitors (shape (N,)).
    c=int  -> min over competitors for cluster c only (static Python int).
    """
    N, D = x.shape
    K, Km1, D2 = W.shape
    assert D2 == D
    assert Km1 >= 1, "need at least 2 clusters (K-1 >= 1)"

    if c is not None:
        # NOTE: c must be a static Python int (selection happens at trace time).
        W = W[c][None]                               # (1, K-1, D)
        b = b[c][None]                               # (1, K-1)
    G, M, _ = W.shape                                # groups to max over, size to min over

    # Pad each group's M rows to a multiple of 8 sublanes; padded rows have
    # W=0 and a huge bias, so they never win the min.
    Mp = _round_up(M, 8)
    big = jnp.finfo(jnp.float32).max
    W_pad = jnp.zeros((G, Mp, D), jnp.float32).at[:, :M, :].set(W.astype(jnp.float32))
    b_pad = jnp.full((G, Mp), big, jnp.float32).at[:, :M].set(b.astype(jnp.float32))
    w_flat = W_pad.reshape(G * Mp, D)                # (G*Mp, D)
    b_col = b_pad.reshape(G * Mp, 1)                 # (G*Mp, 1)

    x_bytes = jnp.dtype(x.dtype).itemsize
    resident = G * Mp * (D + 1) * 4                  # W + b resident in VMEM

    if tn is None:
        # Bytes per streamed row: double-buffered X block + f32 zt temp + output.
        per_row = 2 * D * x_bytes + G * Mp * 4 + 2 * 4
        budget = 36 * 1024 * 1024 - resident         # safe on v7x (64 MiB physical VMEM)
        rows_fit = max(8, budget // per_row)
        # Keep n_tiles >= 2 whenever possible so the 'parallel' axis can shard
        # across v7x's two TensorCores (no-op on v5e/v6e's single core).
        rows_half = _round_up(_ceil_div(N, 2), 128)
        tn = min(rows_fit, rows_half)
        if tn >= 128:
            tn = (tn // 128) * 128                   # lane-dense (unmasked) output stores
        else:
            tn = max(8, (tn // 8) * 8)               # huge-D fallback; see D-tiling TODO
    assert tn % 8 == 0

    n_tiles = _ceil_div(N, tn)                       # last X tile may be ragged (no pad)

    if vmem_limit_bytes is None:
        footprint = 2 * tn * D * x_bytes + tn * G * Mp * 4 + resident + 2 * tn * 4
        vmem_limit_bytes = min(48 * 1024 * 1024,
                               max(16 * 1024 * 1024, 2 * footprint))

    out = pl.pallas_call(
        functools.partial(neuralized_kmeans_kernel, n_groups=G, group_pad=Mp),
        out_shape=jax.ShapeDtypeStruct((n_tiles, 1, tn), jnp.float32),
        grid_spec=pltpu.PrefetchScalarGridSpec(
            num_scalar_prefetch=0,
            grid=(n_tiles,),
            in_specs=[
                # X tile streamed from HBM; last tile reads past N give
                # unspecified rows whose outputs are sliced off below.
                pl.BlockSpec((tn, D), lambda i: (i, 0)),
                pl.BlockSpec((G * Mp, D), lambda i: (0, 0)),      # W (resident, tiny)
                pl.BlockSpec((G * Mp, 1), lambda i: (0, 0)),      # b (resident, tiny)
            ],
            out_specs=pl.BlockSpec((1, 1, tn), lambda i: (i, 0, 0)),
        ),
        compiler_params=pltpu.CompilerParams(
            dimension_semantics=("parallel",),
            vmem_limit_bytes=int(vmem_limit_bytes)),
    )(x, w_flat, b_col)

    return out.reshape(n_tiles * tn)[:N]


def build_neuralized_kmeans_params(centroids):
    """Deterministic construction of W (K, K-1, D) and b (K, K-1) from centroids."""
    K, D = centroids.shape
    norms = jnp.sum(centroids ** 2, axis=-1)          # ||centroid_k||^2
    W_rows, b_rows = [], []
    for c in range(K):
        ks = jnp.array([kk if kk < c else kk + 1 for kk in range(K - 1)])
        W_rows.append(2.0 * (centroids[c] - centroids[ks]))   # (K-1, D)
        b_rows.append(norms[ks] - norms[c])                   # (K-1,)
    return jnp.stack(W_rows), jnp.stack(b_rows)


if __name__ == "__main__":
    N, D, K = 300, 32, 4      # small; exercises a 2-tile grid + ragged last tile

    key = jax.random.PRNGKey(0)
    k_cent, k_x = jax.random.split(key)
    centroids = jax.random.normal(k_cent, (K, D), dtype=jnp.float32)
    # Store X in bfloat16 in HBM: it is the only large stream the kernel reads;
    # the kernel upcasts to f32 on-chip, so no wrapper-side cast copy is paid.
    X = jax.random.normal(k_x, (N, D), dtype=jnp.float32).astype(jnp.bfloat16)

    W, b = build_neuralized_kmeans_params(centroids)

    # c=None branch (max over clusters of min over competitors)
    out = neuralized_kmeans_forward(X, W, b)
    out = jax.block_until_ready(out)

    # c given branch
    out_c = neuralized_kmeans_forward(X, W, b, c=1)
    out_c = jax.block_until_ready(out_c)

    # pure-JAX reference on the exact same (bf16-rounded) inputs, in f32
    Xf = X.astype(jnp.float32)
    z_ref = jnp.einsum('ckd,nd->nck', W, Xf) + b
    ref = z_ref.min(-1).max(-1)
    ref_c = z_ref.min(-1)[:, 1]

    assert out.shape == (N,)
    assert out_c.shape == (N,)
    assert jnp.allclose(out, ref, atol=1e-3, rtol=1e-3), (out, ref)
    assert jnp.allclose(out_c, ref_c, atol=1e-3, rtol=1e-3), (out_c, ref_c)
    print("KERNEL_OK")
</pallas_src>

<mosaic_0001>
module attributes {stable_mosaic.version = 11 : i64} {
  func.func @neuralized_kmeans_kernel(%arg0: i32, %arg1: memref<256x32xbf16, #tpu.memory_space<vmem>>, %arg2: memref<32x32xf32, #tpu.memory_space<vmem>>, %arg3: memref<32x1xf32, #tpu.memory_space<vmem>>, %arg4: memref<1x1x256xf32, #tpu.memory_space<vmem>>) attributes {dimension_semantics = [#tpu.dimension_semantics<parallel>], iteration_bounds = array<i64: 2>, scalar_prefetch = 0 : i64, scratch_operands = 0 : i64, tpu.core_type = #tpu.core_type<tc>, window_params = [{transform_indices = @transform_0, window_bounds = array<i64: 256, 32>}, {pipeline_mode = #tpu.pipeline_mode<synchronous>, transform_indices = @transform_1, window_bounds = array<i64: 32, 32>}, {pipeline_mode = #tpu.pipeline_mode<synchronous>, transform_indices = @transform_2, window_bounds = array<i64: 32, 1>}, {transform_indices = @transform_3, window_bounds = array<i64: 1, 1, 256>}]} {
    %c0 = arith.constant 0 : index
    %c0_0 = arith.constant 0 : index
    %0 = vector.load %arg1[%c0, %c0_0] : memref<256x32xbf16, #tpu.memory_space<vmem>>, vector<256x32xbf16>
    %1 = arith.extf %0 : vector<256x32xbf16> to vector<256x32xf32>
    %c0_1 = arith.constant 0 : index
    %c0_2 = arith.constant 0 : index
    %2 = vector.load %arg2[%c0_1, %c0_2] : memref<32x32xf32, #tpu.memory_space<vmem>>, vector<32x32xf32>
    %cst = arith.constant dense<0.000000e+00> : vector<32x256xf32>
    %3 = tpu.matmul %2, %1, %cst {dimension_numbers = #tpu.dot_dimension_numbers<[1], [1], [0], [0], [0, 0, 1, 0], [], []>} : vector<32x32xf32>, vector<256x32xf32>, vector<32x256xf32> -> vector<32x256xf32>
    %c0_3 = arith.constant 0 : index
    %c0_4 = arith.constant 0 : index
    %4 = vector.load %arg3[%c0_3, %c0_4] : memref<32x1xf32, #tpu.memory_space<vmem>>, vector<32x1xf32>
    %5 = vector.broadcast %4 : vector<32x1xf32> to vector<32x256xf32>
    %6 = arith.addf %3, %5 : vector<32x256xf32>
    %7 = vector.extract_strided_slice %6 {offsets = [0, 0], sizes = [8, 256], strides = [1, 1]} : vector<32x256xf32> to vector<8x256xf32>
    %cst_5 = arith.constant dense<0x7F800000> : vector<256xf32>
    %8 = vector.multi_reduction <minimumf>, %7, %cst_5 [0] : vector<8x256xf32> to vector<256xf32>
    %9 = vector.shape_cast %8 : vector<256xf32> to vector<1x256xf32>
    %10 = vector.extract_strided_slice %6 {offsets = [8, 0], sizes = [8, 256], strides = [1, 1]} : vector<32x256xf32> to vector<8x256xf32>
    %cst_6 = arith.constant dense<0x7F800000> : vector<256xf32>
    %11 = vector.multi_reduction <minimumf>, %10, %cst_6 [0] : vector<8x256xf32> to vector<256xf32>
    %12 = vector.shape_cast %11 : vector<256xf32> to vector<1x256xf32>
    %13 = arith.maximumf %9, %12 : vector<1x256xf32>
    %14 = vector.extract_strided_slice %6 {offsets = [16, 0], sizes = [8, 256], strides = [1, 1]} : vector<32x256xf32> to vector<8x256xf32>
    %cst_7 = arith.constant dense<0x7F800000> : vector<256xf32>
    %15 = vector.multi_reduction <minimumf>, %14, %cst_7 [0] : vector<8x256xf32> to vector<256xf32>
    %16 = vector.shape_cast %15 : vector<256xf32> to vector<1x256xf32>
    %17 = arith.maximumf %13, %16 : vector<1x256xf32>
    %18 = vector.extract_strided_slice %6 {offsets = [24, 0], sizes = [8, 256], strides = [1, 1]} : vector<32x256xf32> to vector<8x256xf32>
    %cst_8 = arith.constant dense<0x7F800000> : vector<256xf32>
    %19 = vector.multi_reduction <minimumf>, %18, %cst_8 [0] : vector<8x256xf32> to vector<256xf32>
    %20 = vector.shape_cast %19 : vector<256xf32> to vector<1x256xf32>
    %21 = arith.maximumf %17, %20 : vector<1x256xf32>
    %c0_9 = arith.constant 0 : index
    %c0_10 = arith.constant 0 : index
    %c0_11 = arith.constant 0 : index
    %22 = vector.load %arg4[%c0_9, %c0_10, %c0_11] : memref<1x1x256xf32, #tpu.memory_space<vmem>>, vector<1x1x256xf32>
    %23 = vector.shape_cast %22 : vector<1x1x256xf32> to vector<1x256xf32>
    %24 = vector.shape_cast %21 : vector<1x256xf32> to vector<1x1x256xf32>
    tpu.vector_store %arg4[%c0_9, %c0_10, %c0_11], %24 {strides = array<i32>} : memref<1x1x256xf32, #tpu.memory_space<vmem>>, vector<1x1x256xf32>,
    return
  }
  func.func @transform_0(%arg0: i32) -> (i32, i32) {
    %c0_i32 = arith.constant 0 : i32
    %c0_i32_0 = arith.constant 0 : i32
    return %arg0, %c0_i32 : i32, i32
  }
  func.func @transform_1(%arg0: i32) -> (i32, i32) {
    %c0_i32 = arith.constant 0 : i32
    %c0_i32_0 = arith.constant 0 : i32
    %c0_i32_1 = arith.constant 0 : i32
    return %c0_i32, %c0_i32_0 : i32, i32
  }
  func.func @transform_2(%arg0: i32) -> (i32, i32) {
    %c0_i32 = arith.constant 0 : i32
    %c0_i32_0 = arith.constant 0 : i32
    %c0_i32_1 = arith.constant 0 : i32
    return %c0_i32, %c0_i32_0 : i32, i32
  }
  func.func @transform_3(%arg0: i32) -> (i32, i32, i32) {
    %c0_i32 = arith.constant 0 : i32
    %c0_i32_0 = arith.constant 0 : i32
    %c0_i32_1 = arith.constant 0 : i32
    return %arg0, %c0_i32, %c0_i32_0 : i32, i32, i32
  }
}

</mosaic_0001>

<bundles_post_ra>
// kernel: tpu_custom_call.1
= control target key start
LH: loop header
LB: loop body
LE: loop exit
PB: predicated region body
PF: predicated region fallthrough
CT: control target
= control target key end

     0   :  { %8 = vsyncpa [#allocation3], 0  ;;  %s1081_s0 = inlined_call_operand.vmem [shape: bf16[300,32], index: 0, kind: input, shape index: {}]   ;;  %s1082_s1 = inlined_call_operand.vmem [shape: f32[32,32], index: 1, kind: input, shape index: {}]   ;;  %s1083_s2 = inlined_call_operand.vmem [shape: f32[32,1], index: 2, kind: input, shape index: {}]   ;;  %s1084_s3 = inlined_call_operand.hbm [shape: f32[2,1,256], index: 3, kind: output, shape index: {}]  }
   0x1   :  { %10 = vsyncpa [#allocation3 + $0x1], 0  ;;  %s879_s12 = smov 0   ;;  %s881_s13 = smov 0  }
   0x2   :  { %s883_s14 = smov 0   ;;  %s885_s15 = smov 0  }
   0x3 LB: > { %s900_s16 = sadd.s32 4294967295, %s856_s15   ;;  %s590_s17 = sadd.s32 4294967294, %s856_s15   ;;  %s856_s15 = sphi %s885_s15, %s1090_s15   ;;  %s852_s14 = sphi %s883_s14, %s1089_s14   ;;  %s848_s13 = sphi %s881_s13, %s1088_s13   ;;  %s844_s12 = sphi %s879_s12, %s1087_s12  }
   0x4   : > { %s904_s18 = sadd.s32 1, %s856_s15   ;;  %s91_s19 = sadd.s32 1, %s852_s14 }
   0x5   : > { %s88_s20 = ssub.s32 %s856_s15, %s904_s18  ;;  %p101_p0 = scmp.ne.s32.totalorder %s852_s14, %s848_s13 }
   0x6   : > { %p89_p1 = scmp.eq.s32.totalorder %s88_s20, 0  ;;  %p102_p2 = scmp.eq.s32.totalorder %s900_s16, 1 }
   0x7   : > { %p107_p3 = scmp.ne.s32.totalorder %s848_s13, %s844_s12  ;;  %p108_p4 = scmp.eq.s32.totalorder %s590_s17, 1 }
   0x8   : > { %s915_s21 = scalar_select %p89_p1, %s852_s14, %s91_s19  }
   0x9   : > { %p917_p5 = por %p102_p2, %p101_p0  ;;  %p921_p6 = por %p108_p4, %p107_p3 }
   0xa   : > { %p593_p7 = scmp.ge.s32.totalorder %s856_s15, 1  ;;  %p149_p8 = scmp.lt.s32.totalorder %s856_s15, 3 }
   0xc   : > { %p150_p9 = pnand %p593_p7, %p149_p8 }
   0xd   : > { %s595_s24 = sshll.u32 (!%p150_p9), %s900_s16, 5  ;;  %s174_s27 = sand.u32 (!%p150_p9), 1, %s848_s13  }
   0xe   : > { %153 = sbr.rel (%p150_p9) target bundleno = 251 (0xfb), region = 32  ;;  %p182_p10 = scmp.lt.s32.totalorder (!%p150_p9), %s595_s24, 37 }
   0xf   : > { %s638_s29 = sshll.u32 (!%p150_p9), %s900_s16, 1  ;;  %s516_s8 = scalar_lea.sflag (!%p150_p9), [#allocation3], %s174_s27 }
  0x10   : > { %s526_s5 = scalar_lea.hbm (!%p150_p9), %s1084_s3, %s638_s29  ;;  %s814_s19 = scalar_lea.hbm (!%p150_p9), %s1084_s3, 4 }
  0x11   : > { %s530_s16 = sshll.u32 (!%p150_p9), %s526_s5, 4  ;;  %s531_s16 = int_to_ptr.hbm [resolvable:$true] %s530_s16 }
  0x12   : > { %s808_s9 = sshra.s32 (!%p150_p9), %s531_s16, 4  ;;  %s809_s9 = int_to_ptr.hbm [resolvable:$true] %s808_s9 }
  0x13   : > { %s1092_s24 = smov (!%p182_p10, %s595_s24), 37  ;;  %vm283_vm0 = vcmask 261120   ;;  %v259_v29 = vld [vmem:[%s1083_s2] sm:$0xff]  ;;  %v858_v33 = vmov 0   ;;  %v261_v37 = vld [vmem:[%s1083_s2 + $0x10] sm:$0xff]  ;;  %v260_v38 = vld [vmem:[%s1083_s2 + $0x8] sm:$0xff]  ;;  %p815_p0 = scmp.lt.s32.totalorder %s809_s9, %s1084_s3 }
  0x14   : > { %s596_s25 = sshll.u32 %s1092_s24, 2  ;;  %792 = vset.pattern.permute.xlu0 %v858_v33  ;;  %793 = vset.pattern.permute.xlu1 %v858_v33  ;;  %v262_v44 = vld [vmem:[%s1083_s2 + $0x18] sm:$0xff]  ;;  %v255_v53 = vld [vmem:[%s1082_s1] sm:$0xff]  ;;  %v257_v54 = vld [vmem:[%s1082_s1 + $0x10] sm:$0xff]  ;;  %vm507_vm1 = vcmask 1040384   ;;  %s810_s10 = scalar_lea.hbm %s809_s9, 2 }
  0x15   : > { %s931_s28 = scalar_lea.vmem %s1081_s0, %s596_s25  ;;  %265 = vperm.xlu0 %792, %v259_v29   ;;  %275 = vperm.xlu1 %793, %v261_v37   ;;  %v256_v55 = vld [vmem:[%s1082_s1 + $0x8] sm:$0xff]  ;;  %v258_v56 = vld [vmem:[%s1082_s1 + $0x18] sm:$0xff]  ;;  %p811_p11 = scmp.ne.s32.totalorder %s809_s9, %s810_s10 }
  0x16   : > { %v711_v0 = vld [vmem:[%s931_s28 + $0x38] sm:$0xff]   ;;  %v710_v6 = vld [vmem:[%s931_s28 + $0x30] sm:$0xff]   ;;  %v709_v12 = vld [vmem:[%s931_s28 + $0x28] sm:$0xff]   ;;  %p816_p1 = scmp.lt.s32.totalorder %s814_s19, %s810_s10 }
  0x17   : > { %v719_v1 = vld [vmem:[%s931_s28 + $0x78] sm:$0xff]   ;;  %v672_v2 = vunpack.c.h.bf16 %v711_v0  ;;  %v671_v4 = vunpack.c.l.bf16 %v711_v0  ;;  %v718_v7 = vld [vmem:[%s931_s28 + $0x70] sm:$0xff]   ;;  %v668_v8 = vunpack.c.h.bf16 %v710_v6  ;;  %v667_v10 = vunpack.c.l.bf16 %v710_v6  ;;  %v717_v13 = vld [vmem:[%s931_s28 + $0x68] sm:$0xff]   ;;  %p812_p12 = pnand %p811_p11, %p917_p5 }
  0x18   : > { %v704_v3 = vunpack.c.h.bf16 %v719_v1  ;;  %v703_v5 = vunpack.c.l.bf16 %v719_v1  ;;  %v700_v9 = vunpack.c.h.bf16 %v718_v7  ;;  %v699_v11 = vunpack.c.l.bf16 %v718_v7  ;;  %v708_v18 = vld [vmem:[%s931_s28 + $0x20] sm:$0xff]   ;;  %v707_v24 = vld [vmem:[%s931_s28 + $0x18] sm:$0xff]   ;;  %v706_v31 = vld [vmem:[%s931_s28 + $0x10] sm:$0xff]   ;;  %p817_p2 = por %p816_p1, %p815_p0 }
  0x19   : > { %597 = vmatpush.xpose.msk.msra.mxu0 %vm283_vm0, %v672_v2  ;;  %720 = vmatpush.xpose.msk.msra.mxu2 %vm283_vm0, %v672_v2  ;;  %v664_v14 = vunpack.c.h.bf16 %v709_v12  ;;  %v696_v15 = vunpack.c.h.bf16 %v717_v13  ;;  %v663_v16 = vunpack.c.l.bf16 %v709_v12  ;;  %v695_v17 = vunpack.c.l.bf16 %v717_v13  ;;  %v716_v19 = vld [vmem:[%s931_s28 + $0x60] sm:$0xff]   ;;  %v715_v25 = vld [vmem:[%s931_s28 + $0x58] sm:$0xff]   ;;  %v714_v32 = vld [vmem:[%s931_s28 + $0x50] sm:$0xff]   ;;  %p813_p13 = pneg %p812_p12 }
  0x1a   : > { %617 = vmatpush.xpose.msk.msra.mxu1 %vm283_vm0, %v704_v3  ;;  %736 = vmatpush.xpose.msk.msra.mxu3 %vm283_vm0, %v704_v3  ;;  %v660_v20 = vunpack.c.h.bf16 %v708_v18  ;;  %v692_v21 = vunpack.c.h.bf16 %v716_v19  ;;  %v659_v22 = vunpack.c.l.bf16 %v708_v18  ;;  %v691_v23 = vunpack.c.l.bf16 %v716_v19  ;;  %v705_v40 = vld [vmem:[%s931_s28 + $0x8] sm:$0xff]   ;;  %v642_v47 = vld [vmem:[%s931_s28] sm:$0xff]  }
  0x1b   : > { %v656_v26 = vunpack.c.h.bf16 %v707_v24  ;;  %v688_v27 = vunpack.c.h.bf16 %v715_v25  ;;  %v655_v28 = vunpack.c.l.bf16 %v707_v24  ;;  %v687_v30 = vunpack.c.l.bf16 %v715_v25  ;;  %v713_v41 = vld [vmem:[%s931_s28 + $0x48] sm:$0xff]   ;;  %v712_v48 = vld [vmem:[%s931_s28 + $0x40] sm:$0xff]   ;;  %s594_s28 = sshll.u32 %s174_s27, 1  ;;  %p818_p3 = pnand %p817_p2, %p813_p13 }
  0x1c   : > { %v652_v34 = vunpack.c.h.bf16 %v706_v31  ;;  %v684_v35 = vunpack.c.h.bf16 %v714_v32  ;;  %v651_v36 = vunpack.c.l.bf16 %v706_v31  ;;  %v683_v39 = vunpack.c.l.bf16 %v714_v32  ;;  %s176_s6 = scalar_lea.vmem [#allocation2], %s594_s28 }
  0x1d   : > { %598 = vmatpush.xpose.msk.msra.mxu0 %vm283_vm0, %v671_v4  ;;  %721 = vmatpush.xpose.msk.msra.mxu2 %vm283_vm0, %v671_v4  ;;  %v648_v42 = vunpack.c.h.bf16 %v705_v40  ;;  %v680_v43 = vunpack.c.h.bf16 %v713_v41  ;;  %v647_v45 = vunpack.c.l.bf16 %v705_v40  ;;  %v679_v46 = vunpack.c.l.bf16 %v713_v41  ;;  %s528_s7 = sshll.u32 %s176_s6, 4  ;;  %s529_s7 = int_to_ptr.vmem [resolvable:$true] %s528_s7 }
  0x1e   : > { %618 = vmatpush.xpose.msk.msra.mxu1 %vm283_vm0, %v703_v5  ;;  %737 = vmatpush.xpose.msk.msra.mxu3 %vm283_vm0, %v703_v5  ;;  %v644_v49 = vunpack.c.h.bf16 %v642_v47  ;;  %v676_v50 = vunpack.c.h.bf16 %v712_v48  ;;  %v643_v51 = vunpack.c.l.bf16 %v642_v47  ;;  %v675_v52 = vunpack.c.l.bf16 %v712_v48 }
  0x1f   : > { %270 = vperm.xlu0 %792, %v260_v38   ;;  %280 = vperm.xlu1 %793, %v262_v44  }
  0x21   : > { %599 = vmatpush.xpose.msk.msra.mxu0 %vm283_vm0, %v668_v8  ;;  %722 = vmatpush.xpose.msk.msra.mxu2 %vm283_vm0, %v668_v8 }
  0x22   : > { %619 = vmatpush.xpose.msk.msra.mxu1 %vm283_vm0, %v700_v9  ;;  %738 = vmatpush.xpose.msk.msra.mxu3 %vm283_vm0, %v700_v9 }
  0x25   : > { %600 = vmatpush.xpose.msk.msra.mxu0 %vm283_vm0, %v667_v10  ;;  %723 = vmatpush.xpose.msk.msra.mxu2 %vm283_vm0, %v667_v10 }
  0x26   : > { %620 = vmatpush.xpose.msk.msra.mxu1 %vm283_vm0, %v699_v11  ;;  %739 = vmatpush.xpose.msk.msra.mxu3 %vm283_vm0, %v699_v11 }
  0x29   : > { %601 = vmatpush.xpose.msk.msra.mxu0 %vm283_vm0, %v664_v14  ;;  %724 = vmatpush.xpose.msk.msra.mxu2 %vm283_vm0, %v664_v14 }
  0x2a   : > { %621 = vmatpush.xpose.msk.msra.mxu1 %vm283_vm0, %v696_v15  ;;  %740 = vmatpush.xpose.msk.msra.mxu3 %vm283_vm0, %v696_v15 }
  0x2d   : > { %602 = vmatpush.xpose.msk.msra.mxu0 %vm283_vm0, %v663_v16  ;;  %725 = vmatpush.xpose.msk.msra.mxu2 %vm283_vm0, %v663_v16 }
  0x2e   : > { %622 = vmatpush.xpose.msk.msra.mxu1 %vm283_vm0, %v695_v17  ;;  %741 = vmatpush.xpose.msk.msra.mxu3 %vm283_vm0, %v695_v17 }
  0x31   : > { %603 = vmatpush.xpose.msk.msra.mxu0 %vm283_vm0, %v660_v20  ;;  %726 = vmatpush.xpose.msk.msra.mxu2 %vm283_vm0, %v660_v20 }
  0x32   : > { %623 = vmatpush.xpose.msk.msra.mxu1 %vm283_vm0, %v692_v21  ;;  %742 = vmatpush.xpose.msk.msra.mxu3 %vm283_vm0, %v692_v21 }
  0x35   : > { %604 = vmatpush.xpose.msk.msra.mxu0 %vm283_vm0, %v659_v22  ;;  %727 = vmatpush.xpose.msk.msra.mxu2 %vm283_vm0, %v659_v22 }
  0x36   : > { %624 = vmatpush.xpose.msk.msra.mxu1 %vm283_vm0, %v691_v23  ;;  %743 = vmatpush.xpose.msk.msra.mxu3 %vm283_vm0, %v691_v23 }
  0x39   : > { %605 = vmatpush.xpose.msk.msra.mxu0 %vm283_vm0, %v656_v26  ;;  %728 = vmatpush.xpose.msk.msra.mxu2 %vm283_vm0, %v656_v26 }
  0x3a   : > { %625 = vmatpush.xpose.msk.msra.mxu1 %vm283_vm0, %v688_v27  ;;  %744 = vmatpush.xpose.msk.msra.mxu3 %vm283_vm0, %v688_v27 }
  0x3d   : > { %606 = vmatpush.xpose.msk.msra.mxu0 %vm283_vm0, %v655_v28  ;;  %729 = vmatpush.xpose.msk.msra.mxu2 %vm283_vm0, %v655_v28 }
  0x3e   : > { %626 = vmatpush.xpose.msk.msra.mxu1 %vm283_vm0, %v687_v30  ;;  %745 = vmatpush.xpose.msk.msra.mxu3 %vm283_vm0, %v687_v30 }
  0x41   : > { %607 = vmatpush.xpose.msk.msra.mxu0 %vm283_vm0, %v652_v34  ;;  %730 = vmatpush.xpose.msk.msra.mxu2 %vm283_vm0, %v652_v34 }
  0x42   : > { %627 = vmatpush.xpose.msk.msra.mxu1 %vm283_vm0, %v684_v35  ;;  %746 = vmatpush.xpose.msk.msra.mxu3 %vm283_vm0, %v684_v35 }
  0x45   : > { %608 = vmatpush.xpose.msk.msra.mxu0 %vm283_vm0, %v651_v36  ;;  %731 = vmatpush.xpose.msk.msra.mxu2 %vm283_vm0, %v651_v36 }
  0x46   : > { %628 = vmatpush.xpose.msk.msra.mxu1 %vm283_vm0, %v683_v39  ;;  %747 = vmatpush.xpose.msk.msra.mxu3 %vm283_vm0, %v683_v39 }
  0x49   : > { %609 = vmatpush.xpose.msk.msra.mxu0 %vm283_vm0, %v648_v42  ;;  %732 = vmatpush.xpose.msk.msra.mxu2 %vm283_vm0, %v648_v42 }
  0x4a   : > { %629 = vmatpush.xpose.msk.msra.mxu1 %vm283_vm0, %v680_v43  ;;  %748 = vmatpush.xpose.msk.msra.mxu3 %vm283_vm0, %v680_v43 }
  0x4d   : > { %610 = vmatpush.xpose.msk.msra.mxu0 %vm283_vm0, %v647_v45  ;;  %733 = vmatpush.xpose.msk.msra.mxu2 %vm283_vm0, %v647_v45 }
  0x4e   : > { %630 = vmatpush.xpose.msk.msra.mxu1 %vm283_vm0, %v679_v46  ;;  %749 = vmatpush.xpose.msk.msra.mxu3 %vm283_vm0, %v679_v46 }
  0x51   : > { %611 = vmatpush.xpose.msk.msra.mxu0 %vm283_vm0, %v644_v49  ;;  %734 = vmatpush.xpose.msk.msra.mxu2 %vm283_vm0, %v644_v49 }
  0x52   : > { %631 = vmatpush.xpose.msk.msra.mxu1 %vm283_vm0, %v676_v50  ;;  %750 = vmatpush.xpose.msk.msra.mxu3 %vm283_vm0, %v676_v50 }
  0x55   : > { %612 = vmatpush.xpose.msk.msra.mxu0 %vm283_vm0, %v643_v51  ;;  %735 = vmatpush.xpose.msk.msra.mxu2 %vm283_vm0, %v643_v51 }
  0x56   : > { %632 = vmatpush.xpose.msk.msra.mxu1 %vm283_vm0, %v675_v52  ;;  %751 = vmatpush.xpose.msk.msra.mxu3 %vm283_vm0, %v675_v52 }
  0x58   : > { %613 = vmatmul.msk.f32.vlgmr.msra.gmra.mxu0 %vm283_vm0, %v255_v53  ;;  %615 = vmatmul.msk.f32.vlgmr.msra.gmra.mxu2 %vm283_vm0, %v257_v54 }
  0x59   : > { %633 = vmatmul.msk.f32.vlgmr.msra.gmra.mxu1 %vm283_vm0, %v255_v53  ;;  %635 = vmatmul.msk.f32.vlgmr.msra.gmra.mxu3 %vm283_vm0, %v257_v54 }
  0x60   : > { %614 = vmatmul.msk.f32.gmra.mxu0 %vm283_vm0, %v256_v55  ;;  %616 = vmatmul.msk.f32.gmra.mxu2 %vm283_vm0, %v258_v56 }
  0x61   : > { %634 = vmatmul.msk.f32.gmra.mxu1 %vm283_vm0, %v256_v55  ;;  %636 = vmatmul.msk.f32.gmra.mxu3 %vm283_vm0, %v258_v56 }
  0x87   : > { %v266_v57 = vpop.permute.xlu0 %265  ;;  %v276_v62 = vpop.permute.xlu1 %275 }
  0x91   : > { %v271_v6 = vpop.permute.xlu0 %270  ;;  %v281_v22 = vpop.permute.xlu1 %280 }
  0xd5   : > { %v409_v58 = vpop.f32.mrf.mxu0 }
  0xd6   : > { %v410_v59 = vadd.f32 %v409_v58, %v266_v57  ;;  %v438_v60 = vpop.f32.mrf.mxu1 }
  0xd7   : > { %v439_v61 = vadd.f32 %v438_v60, %v266_v57  ;;  %v510_v60 = vlaneseq }
  0xd8   : > { %v450_v63 = vrot.slane %v410_v59, 4 }
  0xd9   : > { %v456_v0 = vrot.slane %v439_v61, 4  ;;  %vm512_vm2 = vcmp.lt.s32.totalorder %v510_v60, 256 }
  0xda   : > { %v451_v5 = vmin.f32 %v410_v59, %v450_v63 }
  0xdb   : > { %v457_v1 = vmin.f32 %v439_v61, %v456_v0  ;;  %v415_v2 = vpop.f32.mrf.mxu2 }
  0xdc   : > { %v416_v3 = vadd.f32 %v415_v2, %v276_v62  ;;  %v444_v4 = vpop.f32.mrf.mxu3  ;;  %v452_v16 = vrot.slane %v451_v5, 2 }
  0xdd   : > { %v445_v7 = vadd.f32 %v444_v4, %v276_v62  ;;  %v412_v8 = vpop.f32.mrf.mxu0  ;;  %v458_v9 = vrot.slane %v457_v1, 2 }
  0xde   : > { %v476_v10 = vrot.slane %v416_v3, 4  ;;  %v413_v11 = vadd.f32 %v412_v8, %v271_v6  ;;  %v441_v12 = vpop.f32.mrf.mxu1  ;;  %v453_v29 = vmin.f32 %v451_v5, %v452_v16 }
  0xdf   : > { %v482_v13 = vrot.slane %v445_v7, 4  ;;  %v442_v14 = vadd.f32 %v441_v12, %v271_v6  ;;  %v459_v20 = vmin.f32 %v457_v1, %v458_v9 }
  0xe0   : > { %v462_v15 = vrot.slane %v413_v11, 4  ;;  %v477_v17 = vmin.f32 %v416_v3, %v476_v10  ;;  %v454_v41 = vrot.slane %v453_v29, 1 }
  0xe1   : > { %v483_v18 = vmin.f32 %v445_v7, %v482_v13  ;;  %v468_v19 = vrot.slane %v442_v14, 4  ;;  %v460_v33 = vrot.slane %v459_v20, 1 }
  0xe2   : > { %v463_v21 = vmin.f32 %v413_v11, %v462_v15  ;;  %v478_v30 = vrot.slane %v477_v17, 2  ;;  %v455_v52 = vmin.f32 %v453_v29, %v454_v41 }
  0xe3   : > { %v484_v23 = vrot.slane %v483_v18, 2  ;;  %v469_v24 = vmin.f32 %v442_v14, %v468_v19  ;;  %v418_v25 = vpop.f32.mrf.mxu2  ;;  %v461_v45 = vmin.f32 %v459_v20, %v460_v33 }
  0xe4   : > { %v464_v26 = vrot.slane %v463_v21, 2  ;;  %v419_v27 = vadd.f32 %v418_v25, %v281_v22  ;;  %v447_v28 = vpop.f32.mrf.mxu3  ;;  %v479_v42 = vmin.f32 %v477_v17, %v478_v30 }
  0xe5   : > { %v470_v31 = vrot.slane %v469_v24, 2  ;;  %v448_v32 = vadd.f32 %v447_v28, %v281_v22  ;;  %v485_v36 = vmin.f32 %v483_v18, %v484_v23 }
  0xe6   : > { %v465_v34 = vmin.f32 %v463_v21, %v464_v26  ;;  %v490_v35 = vrot.slane %v419_v27, 4  ;;  %v480_v53 = vrot.slane %v479_v42, 1 }
  0xe7   : > { %v471_v37 = vmin.f32 %v469_v24, %v470_v31  ;;  %v496_v38 = vrot.slane %v448_v32, 4  ;;  %v486_v47 = vrot.slane %v485_v36, 1 }
  0xe8   : > { %v466_v39 = vrot.slane %v465_v34, 1  ;;  %v491_v40 = vmin.f32 %v419_v27, %v490_v35  ;;  %v481_v61 = vmin.f32 %v479_v42, %v480_v53 }
  0xe9   : > { %v472_v43 = vrot.slane %v471_v37, 1  ;;  %v497_v44 = vmin.f32 %v448_v32, %v496_v38  ;;  %v487_v57 = vmin.f32 %v485_v36, %v486_v47 }
  0xea   : > { %v492_v46 = vrot.slane %v491_v40, 2  ;;  %v467_v48 = vmin.f32 %v465_v34, %v466_v39 }
  0xeb   : > { %v473_v49 = vmin.f32 %v471_v37, %v472_v43  ;;  %v498_v50 = vrot.slane %v497_v44, 2 }
  0xec   : > { %v493_v51 = vmin.f32 %v491_v40, %v492_v46  ;;  %v474_v58 = vmax.f32 %v455_v52, %v467_v48 }
  0xed   : > { %v475_v54 = vmax.f32 %v461_v45, %v473_v49  ;;  %v499_v55 = vmin.f32 %v497_v44, %v498_v50 }
  0xee   : > { %v494_v56 = vrot.slane %v493_v51, 1  ;;  %v488_v1 = vmax.f32 %v474_v58, %v481_v61 }
  0xef   : > { %v500_v59 = vrot.slane %v499_v55, 1  ;;  %v489_v63 = vmax.f32 %v475_v54, %v487_v57 }
  0xf0   : > { %v495_v62 = vmin.f32 %v493_v51, %v494_v56 }
  0xf1   : > { %v501_v0 = vmin.f32 %v499_v55, %v500_v59 }
  0xf2   : > { %v502_v3 = vmax.f32 %v488_v1, %v495_v62 }
  0xf3   : > { %v503_v2 = vmax.f32 %v489_v63, %v501_v0 }
  0xf5   : > { %v506_v4 = vrot.slane %v503_v2, 7 }
  0xf7   : > { %v508_v5 = vsel %vm507_vm1, %v502_v3, %v506_v4 }
  0xf8   : > { %514 = vst.msk [vmem:[%s176_s6] sm:$0x3] %vm512_vm2, %v508_v5 }
  0xf9   : > { %821 = shalt.err (!%p818_p3)
}
  0xfa   : > { %752 = dma.vmem_to_hbm [thread:$0]  (%p917_p5), %s529_s7, 32, %s531_s16, %s516_s8  }
  0xfb PF: > { %p758_p4 = scmp.ge.s32.totalorder %s856_s15, 2  ;;  %s542_s25 = sand.u32 1, %s844_s12  }
  0xfc   : > { %s543_s26 = scalar_lea.sflag [#allocation3], %s542_s25 }
  0xfd   : > { %p755_p7 = pnand %p758_p4, %p921_p6 }
  0xff   : > { %p756_p8 = pneg %p755_p7 }
 0x101   : > { %839 = dma.done.wait (%p756_p8), %s543_s26, 32  }
 0x102   : > { %841 = vsyncadd (%p756_p8), %s543_s26, 4294967264  ;;  %p13_p9 = scmp.ge.s32.totalorder %s904_s18, 4   ;;  %s1087_s12 = smov %s848_s13 }
 0x103   : > { %s1088_s13 = smov %s852_s14  ;;  %s1089_s14 = smov %s915_s21 }
 0x104   : > { %s1090_s15 = smov %s904_s18  ;;  %15 = sbr.rel (!%p13_p9) target bundleno = 3 (0x3), region = 67 }
 0x109   :  { %549 = vsyncpa [#allocation3], 1 }
 0x10a   :  { %551 = vsyncpa [#allocation3 + $0x1], 1 }

</bundles_post_ra>
